<compile_context>
chip_gen: v6e
topology: v6e:2x2x1
jax: 0.10.0
libtpu: 0.0.40
codegen_flags: <defaults>
</compile_context>

<pallas_src>
import functools

import jax
import jax.numpy as jnp
from jax import lax
from jax.experimental import pallas as pl
from jax.experimental.pallas import tpu as pltpu

_LANE = 128
_SUBLANE = 8


def _round_up(x: int, m: int) -> int:
    return ((x + m - 1) // m) * m


def _ceil_div(a: int, b: int) -> int:
    return -(-a // b)


# ---------------------------------------------------------------------------
# Fused kernel: whole MLP on one batch tile, batch on the lane axis.
# ---------------------------------------------------------------------------
def _mlp_fused_kernel(x_ref, *refs, num_layers: int):
    """refs = (w_0, b_0, w_1, b_1, ..., o_ref).

    x_ref : (TB, in_features)   VMEM batch tile (natural HBM layout, unpadded)
    w_l   : (out_l, in_l)       VMEM, resident (natural orientation)
    b_l   : (out_l, 1)          VMEM, resident (broadcasts over the lane axis)
    o_ref : (out_last, TB)      VMEM, lane-dense output tile
    """
    param_refs = refs[:-1]
    o_ref = refs[-1]

    x = x_ref[...]                                    # (TB, in_features)

    # Layer 0:  h_T = W0 @ x^T  -- contract the feature axis of both operands
    # (the q @ k.T MXU pattern; no transpose of the streamed input needed).
    h = lax.dot_general(
        param_refs[0][...], x,
        dimension_numbers=(((1,), (1,)), ((), ())),
        preferred_element_type=jnp.float32,
    ) + param_refs[1][...]
    if num_layers > 1:                                # ReLU after all but last
        h = jnp.maximum(h, 0.0)

    for layer in range(1, num_layers):
        w = param_refs[2 * layer][...]
        b = param_refs[2 * layer + 1][...]
        h = jnp.dot(w, h, preferred_element_type=jnp.float32) + b
        if layer < num_layers - 1:
            h = jnp.maximum(h, 0.0)

    o_ref[...] = h.astype(o_ref.dtype)                # (out_last, TB)


# ---------------------------------------------------------------------------
# Parameter preparation (done ONCE, outside the forward pass).
# ---------------------------------------------------------------------------
def init_mlp_params(key, input_dim, hidden_dim, num_hidden_layers, output_dim,
                    dtype=jnp.float32):
    """Mirror torch.nn.Linear default init: U[-1/sqrt(fan_in), 1/sqrt(fan_in)]."""
    dims = [input_dim] + [hidden_dim] * num_hidden_layers + [output_dim]
    params = []
    for fan_in, fan_out in zip(dims[:-1], dims[1:]):
        key, kw, kb = jax.random.split(key, 3)
        bound = 1.0 / jnp.sqrt(jnp.asarray(fan_in, dtype))
        w = jax.random.uniform(kw, (fan_out, fan_in), dtype, -bound, bound)
        b = jax.random.uniform(kb, (fan_out,), dtype, -bound, bound)
        params.append((w, b))
    return params


def prepare_mlp_params(params):
    """Keep W in its natural (out, in) orientation (no transpose, no padding);
    reshape bias to (out, 1) so it broadcasts over the lane/batch axis."""
    return [(w, b.reshape(b.shape[0], 1)) for w, b in params]


# ---------------------------------------------------------------------------
# Batch tiling choice.
# ---------------------------------------------------------------------------
def _choose_batch_tiling(batch: int, batch_tile: int):
    """Return (padded_batch, tile) for the batch axis (batch lives on lanes).

    * Single step when the batch fits one tile: tb == pb (full-dim blocks, no
      128-lane divisibility needed), pb only rounded to the sublane multiple
      of 8 (e.g. batch=70 -> 72, not 128: near-zero padding waste).
    * Multi step: balanced tiles rounded up to 128 lanes so the lane-dense
      output blocks stay unmasked; pb = n_steps * tb.
    * Moderately large single-tile batches are force-split into 2 steps so
      both v7x TensorCores get a share of the ("parallel") grid.
    """
    batch_tile = max(_LANE, _round_up(batch_tile, _LANE))
    n_steps = max(1, _ceil_div(batch, batch_tile))
    if n_steps == 1 and batch >= 4 * _LANE:
        n_steps = 2  # v7x megacore: don't leave a TensorCore idle
    if n_steps == 1:
        pb = _round_up(batch, _SUBLANE)
        return pb, pb
    tb = _round_up(_ceil_div(batch, n_steps), _LANE)
    return n_steps * tb, tb


# ---------------------------------------------------------------------------
# Forward pass.
# ---------------------------------------------------------------------------
def mlp_forward(x, prepared_params, output_dim, batch_tile=1024):
    """Fused MLP forward: one pallas_call over batch tiles."""
    batch, in_features = x.shape
    num_layers = len(prepared_params)

    pb, tb = _choose_batch_tiling(batch, batch_tile)
    if pb != batch:
        xp = jnp.zeros((pb, in_features), x.dtype).at[:batch].set(x)
    else:
        xp = x

    # Flatten params + build specs.  Weights / biases are resident: constant
    # index_map -> fetched once and reused every grid step.  (pl.Buffered(1)
    # would halve their footprint, but at these widths it is negligible.)
    flat_params = []
    in_specs = [pl.BlockSpec((tb, in_features), lambda i: (i, 0))]
    for w, b in prepared_params:
        flat_params.append(w)
        flat_params.append(b)
        in_specs.append(pl.BlockSpec(w.shape, lambda i: (0, 0)))
        in_specs.append(pl.BlockSpec(b.shape, lambda i: (0, 0)))

    # VMEM budget: double-buffered x / out tiles + resident params + f32
    # intermediates, with 2x margin.  Generation-aware cap: 3/4 of detected
    # VMEM capacity (v7x: 64 MiB -> ~48 MiB; v5e/v6e: 128 MiB -> ~96 MiB).
    itemsize = x.dtype.itemsize
    param_bytes = sum(p.size * p.dtype.itemsize
                      for pair in prepared_params for p in pair)
    widths = [in_features] + [w.shape[0] for w, _ in prepared_params]
    stream_bytes = 2 * tb * (in_features + output_dim) * itemsize
    work_bytes = 2 * tb * max(widths) * 4
    needed = 2 * (2 * param_bytes + stream_bytes + work_bytes)
    try:
        capacity = int(getattr(pltpu.get_tpu_info(), "vmem_capacity_bytes",
                               128 << 20))
    except Exception:
        capacity = 128 << 20
    vmem_limit = int(min(max(needed, 16 << 20), (capacity * 3) // 4))

    kernel = functools.partial(_mlp_fused_kernel, num_layers=num_layers)

    out_t = pl.pallas_call(
        kernel,
        out_shape=jax.ShapeDtypeStruct((output_dim, pb), x.dtype),
        grid=(pb // tb,),
        in_specs=in_specs,
        out_specs=pl.BlockSpec((output_dim, tb), lambda i: (0, i)),
        compiler_params=pltpu.CompilerParams(
            dimension_semantics=("parallel",),
            vmem_limit_bytes=vmem_limit,
        ),
    )(xp, *flat_params)

    # (output_dim, pb) -> (batch, output_dim); only output_dim*batch elements.
    return out_t[:, :batch].T


def mlp_forward_ref(x, params):
    """Pure-JAX reference for correctness checking."""
    out = x
    n = len(params)
    for idx, (w, b) in enumerate(params):
        out = out @ w.T + b
        if idx < n - 1:
            out = jnp.maximum(out, 0.0)
    return out


if __name__ == "__main__":
    key = jax.random.PRNGKey(0)

    # Config 1: module defaults (hidden=32, 1 hidden layer, output=1), batch=2.
    k_in, k_par, key = jax.random.split(key, 3)
    batch, input_dim, hidden_dim, num_hidden_layers, output_dim = 2, 16, 32, 1, 1
    x = jax.random.normal(k_in, (batch, input_dim), dtype=jnp.float32)
    params = init_mlp_params(k_par, input_dim, hidden_dim,
                             num_hidden_layers, output_dim)
    prepared = prepare_mlp_params(params)

    out = mlp_forward(x, prepared, output_dim)
    out = jax.block_until_ready(out)
    ref = mlp_forward_ref(x, params)
    assert out.shape == (batch, output_dim), out.shape
    assert jnp.allclose(out, ref, atol=1e-4, rtol=1e-4), (out, ref)

    # Config 2: deeper net + ragged batch (70 -> padded only to 72, single tile).
    k_in2, k_par2, key = jax.random.split(key, 3)
    batch2, input_dim2, hidden2, nhid2, output_dim2 = 70, 48, 32, 3, 5
    x2 = jax.random.normal(k_in2, (batch2, input_dim2), dtype=jnp.float32)
    params2 = init_mlp_params(k_par2, input_dim2, hidden2, nhid2, output_dim2)
    prepared2 = prepare_mlp_params(params2)

    out2 = mlp_forward(x2, prepared2, output_dim2)
    out2 = jax.block_until_ready(out2)
    ref2 = mlp_forward_ref(x2, params2)
    assert out2.shape == (batch2, output_dim2), out2.shape
    assert jnp.allclose(out2, ref2, atol=1e-4, rtol=1e-4), (out2, ref2)

    # Config 3: larger ragged batch with a multi-step grid (balanced 128 tiles).
    k_in3, k_par3 = jax.random.split(key)
    batch3, input_dim3, hidden3, nhid3, output_dim3 = 300, 48, 64, 2, 5
    x3 = jax.random.normal(k_in3, (batch3, input_dim3), dtype=jnp.float32)
    params3 = init_mlp_params(k_par3, input_dim3, hidden3, nhid3, output_dim3)
    prepared3 = prepare_mlp_params(params3)

    out3 = mlp_forward(x3, prepared3, output_dim3, batch_tile=128)
    out3 = jax.block_until_ready(out3)
    ref3 = mlp_forward_ref(x3, params3)
    assert out3.shape == (batch3, output_dim3), out3.shape
    assert jnp.allclose(out3, ref3, atol=1e-4, rtol=1e-4), (out3, ref3)

    print("KERNEL_OK")
</pallas_src>

<mosaic_0001>
module attributes {stable_mosaic.version = 11 : i64} {
  func.func @_mlp_fused_kernel(%arg0: i32, %arg1: memref<8x16xf32, #tpu.memory_space<vmem>>, %arg2: memref<32x16xf32, #tpu.memory_space<vmem>>, %arg3: memref<32x1xf32, #tpu.memory_space<vmem>>, %arg4: memref<1x32xf32, #tpu.memory_space<vmem>>, %arg5: memref<1x1xf32, #tpu.memory_space<vmem>>, %arg6: memref<1x8xf32, #tpu.memory_space<vmem>>) attributes {dimension_semantics = [#tpu.dimension_semantics<parallel>], iteration_bounds = array<i64: 1>, scalar_prefetch = 0 : i64, scratch_operands = 0 : i64, tpu.core_type = #tpu.core_type<tc>, window_params = [{transform_indices = @transform_0, window_bounds = array<i64: 8, 16>}, {pipeline_mode = #tpu.pipeline_mode<synchronous>, transform_indices = @transform_1, window_bounds = array<i64: 32, 16>}, {pipeline_mode = #tpu.pipeline_mode<synchronous>, transform_indices = @transform_2, window_bounds = array<i64: 32, 1>}, {pipeline_mode = #tpu.pipeline_mode<synchronous>, transform_indices = @transform_3, window_bounds = array<i64: 1, 32>}, {pipeline_mode = #tpu.pipeline_mode<synchronous>, transform_indices = @transform_4, window_bounds = array<i64: 1, 1>}, {transform_indices = @transform_5, window_bounds = array<i64: 1, 8>}]} {
    %c0 = arith.constant 0 : index
    %c0_0 = arith.constant 0 : index
    %0 = vector.load %arg1[%c0, %c0_0] : memref<8x16xf32, #tpu.memory_space<vmem>>, vector<8x16xf32>
    %c0_1 = arith.constant 0 : index
    %c0_2 = arith.constant 0 : index
    %1 = vector.load %arg2[%c0_1, %c0_2] : memref<32x16xf32, #tpu.memory_space<vmem>>, vector<32x16xf32>
    %cst = arith.constant dense<0.000000e+00> : vector<32x8xf32>
    %2 = tpu.matmul %1, %0, %cst {dimension_numbers = #tpu.dot_dimension_numbers<[1], [1], [0], [0], [0, 0, 1, 0], [], []>} : vector<32x16xf32>, vector<8x16xf32>, vector<32x8xf32> -> vector<32x8xf32>
    %c0_3 = arith.constant 0 : index
    %c0_4 = arith.constant 0 : index
    %3 = vector.load %arg3[%c0_3, %c0_4] : memref<32x1xf32, #tpu.memory_space<vmem>>, vector<32x1xf32>
    %4 = vector.broadcast %3 : vector<32x1xf32> to vector<32x8xf32>
    %5 = arith.addf %2, %4 : vector<32x8xf32>
    %cst_5 = arith.constant 0.000000e+00 : f32
    %6 = vector.broadcast %cst_5 : f32 to vector<32x8xf32>
    %7 = arith.maximumf %5, %6 : vector<32x8xf32>
    %c0_6 = arith.constant 0 : index
    %c0_7 = arith.constant 0 : index
    %8 = vector.load %arg4[%c0_6, %c0_7] : memref<1x32xf32, #tpu.memory_space<vmem>>, vector<1x32xf32>
    %c0_8 = arith.constant 0 : index
    %c0_9 = arith.constant 0 : index
    %9 = vector.load %arg5[%c0_8, %c0_9] : memref<1x1xf32, #tpu.memory_space<vmem>>, vector<1x1xf32>
    %cst_10 = arith.constant dense<0.000000e+00> : vector<1x8xf32>
    %10 = tpu.matmul %8, %7, %cst_10 {dimension_numbers = #tpu.dot_dimension_numbers<[1], [0], [0], [1], [0, 0, 1, 1], [], []>} : vector<1x32xf32>, vector<32x8xf32>, vector<1x8xf32> -> vector<1x8xf32>
    %11 = vector.broadcast %9 : vector<1x1xf32> to vector<1x8xf32>
    %12 = arith.addf %10, %11 : vector<1x8xf32>
    %c0_11 = arith.constant 0 : index
    %c0_12 = arith.constant 0 : index
    %13 = vector.load %arg6[%c0_11, %c0_12] : memref<1x8xf32, #tpu.memory_space<vmem>>, vector<1x8xf32>
    tpu.vector_store %arg6[%c0_11, %c0_12], %12 {strides = array<i32>} : memref<1x8xf32, #tpu.memory_space<vmem>>, vector<1x8xf32>,
    return
  }
  func.func @transform_0(%arg0: i32) -> (i32, i32) {
    %c0_i32 = arith.constant 0 : i32
    %c0_i32_0 = arith.constant 0 : i32
    return %arg0, %c0_i32 : i32, i32
  }
  func.func @transform_1(%arg0: i32) -> (i32, i32) {
    %c0_i32 = arith.constant 0 : i32
    %c0_i32_0 = arith.constant 0 : i32
    %c0_i32_1 = arith.constant 0 : i32
    return %c0_i32, %c0_i32_0 : i32, i32
  }
  func.func @transform_2(%arg0: i32) -> (i32, i32) {
    %c0_i32 = arith.constant 0 : i32
    %c0_i32_0 = arith.constant 0 : i32
    %c0_i32_1 = arith.constant 0 : i32
    return %c0_i32, %c0_i32_0 : i32, i32
  }
  func.func @transform_3(%arg0: i32) -> (i32, i32) {
    %c0_i32 = arith.constant 0 : i32
    %c0_i32_0 = arith.constant 0 : i32
    %c0_i32_1 = arith.constant 0 : i32
    return %c0_i32, %c0_i32_0 : i32, i32
  }
  func.func @transform_4(%arg0: i32) -> (i32, i32) {
    %c0_i32 = arith.constant 0 : i32
    %c0_i32_0 = arith.constant 0 : i32
    %c0_i32_1 = arith.constant 0 : i32
    return %c0_i32, %c0_i32_0 : i32, i32
  }
  func.func @transform_5(%arg0: i32) -> (i32, i32) {
    %c0_i32 = arith.constant 0 : i32
    %c0_i32_0 = arith.constant 0 : i32
    return %c0_i32, %arg0 : i32, i32
  }
}

</mosaic_0001>

<bundles_post_ra>
// kernel: tpu_custom_call.1
= control target key start
LH: loop header
LB: loop body
LE: loop exit
PB: predicated region body
PF: predicated region fallthrough
CT: control target
= control target key end

     0   :  { %s397_s0 = inlined_call_operand.vmem [shape: f32[8,16], index: 0, kind: input, shape index: {}]   ;;  %s398_s1 = inlined_call_operand.vmem [shape: f32[32,16], index: 1, kind: input, shape index: {}]   ;;  %s399_s2 = inlined_call_operand.vmem [shape: f32[32,1], index: 2, kind: input, shape index: {}]   ;;  %s400_s3 = inlined_call_operand.vmem [shape: f32[1,32], index: 3, kind: input, shape index: {}]   ;;  %s401_s4 = inlined_call_operand.<no memory space> [shape: f32[1,1], index: 4, kind: input, shape index: {}]   ;;  %s402_s5 = inlined_call_operand.hbm [shape: f32[1,8], index: 5, kind: output, shape index: {}]  }
   0x1   :  { %v10_v0 = vstv %s401_s4 }
   0x2   :  { %11 = vst [vmem:[#allocation2] sm:$0x1] %v10_v0 }
   0x3   :  { %v23_v1 = vld [vmem:[%s397_s0] sm:$0xff]  ;;  %vm52_vm0 = vcmask 130048   ;;  %v31_v3 = vld [vmem:[%s399_s2 + $0x18] sm:$0xff]  ;;  %v25_v4 = vld [vmem:[%s398_s1 + $0x8] sm:$0xff]  ;;  %v321_v5 = vmov 0  }
   0x4   :  { %v24_v2 = vld [vmem:[%s398_s1] sm:$0xff]  ;;  %274 = vmatprep.subr.msk.mxu0 %vm52_vm0, %v23_v1  ;;  %297 = vset.pattern.permute.xlu0 %v321_v5  ;;  %v29_v6 = vld [vmem:[%s399_s2 + $0x8] sm:$0xff]  ;;  %v26_v7 = vld [vmem:[%s398_s1 + $0x10] sm:$0xff] }
   0x5   :  { %276 = vmatprep.mubr.msk.f32.mxu0 %vm52_vm0, %v24_v2  ;;  %275 = vmatpush3.xpose.msk.msra.mxu0 %vm52_vm0, %v23_v1 }
   0x6   :  { %49 = vperm.xlu0 %297, %v31_v3   ;;  %298 = vset.pattern.permute.xlu1 %v321_v5 }
   0x7   :  { %12 = vsyncpa [#allocation4], 0  ;;  %v30_v8 = vld [vmem:[%s399_s2 + $0x10] sm:$0xff]  ;;  %39 = vperm.xlu1 %298, %v29_v6   ;;  %v28_v9 = vld [vmem:[%s399_s2] sm:$0xff]  ;;  %v322_v12 = vmov 0.0   ;;  %vm323_vm1 = vmmov 0   ;;  %v164_v30 = vlaneseq }
   0x8   :  { %277 = vmatmul.mubr.msk.f32.vlgmr.msra.gmra.mxu0 %vm52_vm0, %v25_v4  ;;  %v27_v10 = vld [vmem:[%s398_s1 + $0x18] sm:$0xff]  ;;  %282 = vmatprep.subr.mxu1 %v322_v12  ;;  %v157_v29 = vld [vmem:[%s400_s3] sm:$0x1]  ;;  %vm168_vm2 = vcmask 261120   ;;  %s324_s11 = smov [#allocation3]   ;;  %vm242_vm3 = vcmask 57344  }
   0x9   :  { %279 = vmatprep.mubr.msk.f32.mxu0 %vm52_vm0, %v26_v7  ;;  %v158_v11 = vld [vmem:[#allocation2] sm:$0x1]  ;;  %290 = vmatprep.mubr.msk.f32.mxu1 %vm323_vm1, %v322_v12  ;;  %v165_v31 = vshrl.u32 %v164_v30, 7  ;;  %s250_s12 = sshll.u32 %s324_s11, 4  ;;  %s251_s12 = int_to_ptr.vmem [resolvable:$true] %s250_s12 }
   0xa   :  { %44 = vperm.xlu0 %297, %v30_v8   ;;  %s299_s13 = scalar_lea.vmem %s251_s12, 16  ;;  %s303_s3 = scalar_lea.vmem %s251_s12, 32 }
   0xb   :  { %34 = vperm.xlu1 %298, %v28_v9   ;;  %v166_v32 = vsub.s32 0, %v165_v31  ;;  %p300_p0 = scmp.ne.s32.totalorder %s251_s12, %s299_s13  ;;  %p304_p1 = scmp.lt.s32.totalorder %s251_s12, %s251_s12 }
   0xc   :  { %280 = vmatmul.mubr.msk.f32.gmra.mxu0 %vm52_vm0, %v27_v10  ;;  %p305_p2 = scmp.lt.s32.totalorder %s303_s3, %s299_s13 }
   0xe   :  { %161 = vperm.xlu0 %297, %v158_v11   ;;  %p306_p3 = por %p305_p2, %p304_p1 }
  0x10   :  { %p307_p4 = pnand %p306_p3, %p300_p0 }
  0x81   :  { %v50_v13 = vpop.permute.xlu0 %49 }
  0x82   :  { %v40_v14 = vpop.permute.xlu1 %39 }
  0x85   :  { %v45_v18 = vpop.permute.xlu0 %44 }
  0x86   :  { %v35_v20 = vpop.permute.xlu1 %34 }
  0x89   :  { %v162_v33 = vpop.permute.xlu0 %161 }
  0x8a   :  { %v167_v34 = vrot.slane %v162_v33, %v166_v32 }
  0xc8   :  { %v278_v15 = vpop.f32.mrf.mxu0 }
  0xc9   :  { %v140_v22 = vadd.f32 %v278_v15, %v40_v14 }
  0xca   :  { %v134_v16 = vpop.f32.mrf.mxu0 }
  0xcb   :  { %v135_v25 = vadd.f32 %v134_v16, %v35_v20  ;;  %v154_v27 = vmax.f32 %v140_v22, 0.0 }
  0xcc   :  { %v281_v17 = vpop.f32.mrf.mxu0 }
  0xcd   :  { %v150_v19 = vadd.f32 %v281_v17, %v50_v13  ;;  %v153_v28 = vmax.f32 %v135_v25, 0.0 }
  0xce   :  { %v144_v21 = vpop.f32.mrf.mxu0 }
  0xcf   :  { %v156_v23 = vmax.f32 %v150_v19, 0.0  ;;  %v145_v24 = vadd.f32 %v144_v21, %v45_v18 }
  0xd1   :  { %v155_v26 = vmax.f32 %v145_v24, 0.0  ;;  %283 = vmatpush3.msra.mxu1 %v156_v23 }
  0xd2   :  { %284 = vmatprep.subr.mxu1 %v322_v12 }
  0xd3   :  { %285 = vmatpush3.msra.mxu1 %v155_v26 }
  0xd4   :  { %286 = vmatprep.subr.mxu1 %v322_v12 }
  0xd5   :  { %287 = vmatpush3.msra.mxu1 %v154_v27 }
  0xd6   :  { %288 = vmatprep.subr.mxu1 %v322_v12 }
  0xd7   :  { %289 = vmatpush3.msra.mxu1 %v153_v28 }
  0xd8   :  { %291 = vmatmul.mubr.msk.f32.vlgmr.msra.gmra.mxu1 %vm168_vm2, %v157_v29 }
 0x198   :  { %v238_v35 = vpop.f32.mrf.mxu1 }
 0x199   :  { %v239_v36 = vadd.f32 %v238_v35, %v167_v34 }
 0x19a   :  { %v292_v37 = vpop.f32.mrf.mxu1 }
 0x19b   :  { %243 = vst.msk [vmem:[#allocation3] sm:$0x1] %vm242_vm3, %v239_v36 }
 0x19c   :  { %310 = shalt.err (!%p307_p4)
}
 0x19d   :  { %253 = dma.vmem_to_hbm [thread:$0]  %s251_s12, 16, %s402_s5, [#allocation4]  }
 0x19e   :  { %319 = dma.done.wait [#allocation4], 16  }
 0x19f   :  { %320 = vsyncadd [#allocation4], 4294967280 }
 0x1a0   :  { %257 = vsyncpa [#allocation4], 1 }

</bundles_post_ra>
